<compile_context>
chip_gen: v5e
topology: v5e:2x2
jax: 0.10.0
libtpu: 0.0.40
codegen_flags: <defaults>
</compile_context>

<pallas_src>
import functools

import jax
import jax.numpy as jnp
from jax import lax
from jax.experimental import pallas as pl
from jax.experimental.pallas import tpu as pltpu

BN_EPS = 1e-5
LEAKY_SLOPE = 0.2
VMEM_LIMIT = 32 * 1024 * 1024  # explicit scoped-VMEM limit, safe on v5e/v6e/v7x


def _round_up(a, b):
    return (a + b - 1) // b * b


def _conv_stats_kernel(p_ref, w_ref, y_ref, stats_ref, *scratch, num_k):
    """Pass 1: conv-as-matmul tile + per-channel sum / sum-of-squares.

    p_ref    : (tm, tk)       im2col patches tile (bf16)
    w_ref    : (tk, Coutp)    weight tile (bf16, Cout padded to 128)
    y_ref    : (tm, Coutp)    raw conv output tile (f32)
    stats_ref: (1, 2, Coutp)  [sum, sumsq] over this M tile (f32)
    scratch  : optional (tm, Coutp) f32 accumulator, only when num_k > 1
    """

    def _epilogue(y):
        y_ref[...] = y.astype(y_ref.dtype)
        s = jnp.sum(y, axis=0, keepdims=True)          # (1, Coutp)
        sq = jnp.sum(y * y, axis=0, keepdims=True)     # (1, Coutp)
        stats_ref[...] = jnp.concatenate([s, sq], axis=0)[None]

    if num_k == 1:
        _epilogue(jnp.dot(p_ref[...], w_ref[...],
                          preferred_element_type=jnp.float32))
    else:
        acc_ref, = scratch
        k = pl.program_id(1)

        @pl.when(k == 0)
        def _():
            acc_ref[...] = jnp.zeros_like(acc_ref)

        acc_ref[...] += jnp.dot(p_ref[...], w_ref[...],
                                preferred_element_type=jnp.float32)

        @pl.when(k == num_k - 1)
        def _():
            _epilogue(acc_ref[...])


def _bn_lrelu_kernel(y_ref, scale_ref, shift_ref, o_ref):
    """Pass 2: y * scale + shift, then LeakyReLU(0.2)."""
    z = y_ref[...] * scale_ref[...] + shift_ref[...]
    o_ref[...] = jnp.where(z >= 0, z, LEAKY_SLOPE * z).astype(o_ref.dtype)


def _im2col_s2k4p1(x):
    """x: (N, Cin, H, W) -> patches (N*Ho*Wo, Cin*16), Ho=H//2, Wo=W//2."""
    n, cin, h, w = x.shape
    ho, wo = h // 2, w // 2
    xp = jnp.pad(x, ((0, 0), (0, 0), (1, 1), (1, 1)))
    cols = []
    for ki in range(4):
        for kj in range(4):
            cols.append(xp[:, :, ki:ki + 2 * ho:2, kj:kj + 2 * wo:2])
    p = jnp.stack(cols, axis=2).reshape(n, cin, 4, 4, ho, wo)
    p = jnp.transpose(p, (0, 4, 5, 1, 2, 3))            # (N, Ho, Wo, Cin, 4, 4)
    return p.reshape(n * ho * wo, cin * 16), (n, ho, wo)


def _spectral_normalize(w, n_iters=8):
    """Power-iteration spectral normalization (matches PyTorch's scheme).

    w: (Cout, Cin, 4, 4) -> w / sigma_est(w.reshape(Cout, -1)).
    """
    w2d = w.reshape(w.shape[0], -1)
    u0 = jnp.ones((w2d.shape[0],), w2d.dtype) / jnp.sqrt(
        jnp.asarray(w2d.shape[0], w2d.dtype))

    def body(_, u):
        v = w2d.T @ u
        v = v / (jnp.linalg.norm(v) + 1e-12)
        u = w2d @ v
        u = u / (jnp.linalg.norm(u) + 1e-12)
        return u

    u = lax.fori_loop(0, n_iters, body, u0)
    v = w2d.T @ u
    v = v / (jnp.linalg.norm(v) + 1e-12)
    sigma = u @ (w2d @ v)
    return w / sigma


@jax.jit
def downblock_forward(x, weight, gamma, beta):
    """x: (N, Cin, H, W) f32 -> (N, Cout, H//2, W//2) f32."""
    x = x.astype(jnp.float32)
    w_sn = _spectral_normalize(weight.astype(jnp.float32))  # (Cout, Cin, 4, 4)
    cout = w_sn.shape[0]

    # ---- im2col (bf16 for the MXU / halved HBM traffic) ----
    patches, (n, ho, wo) = _im2col_s2k4p1(x)
    m, k_dim = patches.shape

    # ---- padded / tiled problem sizes ----
    coutp = _round_up(cout, 128)                 # lane-dense output
    k_pad = _round_up(k_dim, 128)                # full MXU contraction depth
    tm = min(512, _round_up(m, 8))               # fits VMEM on v7x (64 MiB) too
    m_pad = _round_up(m, tm)
    tk = min(512, k_pad)
    num_m = m_pad // tm
    num_k = k_pad // tk

    patches_p = jnp.pad(patches, ((0, m_pad - m), (0, k_pad - k_dim))
                        ).astype(jnp.bfloat16)
    w_mat = w_sn.reshape(cout, -1).T                         # (K, Cout)
    w_mat = jnp.pad(w_mat, ((0, k_pad - k_dim), (0, coutp - cout))
                    ).astype(jnp.bfloat16)

    # ---- pass 1: conv matmul + per-tile channel sums ----
    kernel1 = functools.partial(_conv_stats_kernel, num_k=num_k)
    scratch = [pltpu.VMEM((tm, coutp), jnp.float32)] if num_k > 1 else []
    y, stats = pl.pallas_call(
        kernel1,
        out_shape=(jax.ShapeDtypeStruct((m_pad, coutp), jnp.float32),
                   jax.ShapeDtypeStruct((num_m, 2, coutp), jnp.float32)),
        grid_spec=pltpu.PrefetchScalarGridSpec(
            num_scalar_prefetch=0,
            grid=(num_m, num_k),
            in_specs=[
                pl.BlockSpec((tm, tk), lambda mi, ki: (mi, ki)),     # patches
                pl.BlockSpec((tk, coutp), lambda mi, ki: (ki, 0)),   # weight
            ],
            out_specs=[
                pl.BlockSpec((tm, coutp), lambda mi, ki: (mi, 0)),   # conv out
                pl.BlockSpec((1, 2, coutp), lambda mi, ki: (mi, 0, 0)),  # stats
            ],
            scratch_shapes=scratch,
        ),
        compiler_params=pltpu.CompilerParams(
            dimension_semantics=("parallel", "arbitrary"),
            vmem_limit_bytes=VMEM_LIMIT),
    )(patches_p, w_mat)

    # ---- tiny global BN-stat reduction (biased variance, divisor = real M) ----
    sums = jnp.sum(stats[:, 0, :], axis=0)                   # (Coutp,)
    sumsq = jnp.sum(stats[:, 1, :], axis=0)                  # (Coutp,)
    mean = sums / float(m)
    var = jnp.maximum(sumsq / float(m) - mean * mean, 0.0)
    inv_std = lax.rsqrt(var + BN_EPS)
    gamma_p = jnp.pad(gamma.astype(jnp.float32), (0, coutp - cout))
    beta_p = jnp.pad(beta.astype(jnp.float32), (0, coutp - cout))
    scale = (gamma_p * inv_std).reshape(1, coutp)
    shift = (beta_p - mean * gamma_p * inv_std).reshape(1, coutp)

    # ---- pass 2: apply BN + LeakyReLU ----
    out2d = pl.pallas_call(
        _bn_lrelu_kernel,
        out_shape=jax.ShapeDtypeStruct((m_pad, coutp), jnp.float32),
        grid_spec=pltpu.PrefetchScalarGridSpec(
            num_scalar_prefetch=0,
            grid=(num_m,),
            in_specs=[
                pl.BlockSpec((tm, coutp), lambda mi: (mi, 0)),
                pl.BlockSpec((1, coutp), lambda mi: (0, 0)),
                pl.BlockSpec((1, coutp), lambda mi: (0, 0)),
            ],
            out_specs=pl.BlockSpec((tm, coutp), lambda mi: (mi, 0)),
        ),
        compiler_params=pltpu.CompilerParams(
            dimension_semantics=("parallel",),
            vmem_limit_bytes=VMEM_LIMIT),
    )(y, scale, shift)

    out = out2d[:m, :cout].reshape(n, ho, wo, cout)          # (N, Ho, Wo, Cout)
    return jnp.transpose(out, (0, 3, 1, 2))                  # NCHW


def _reference(x, weight, gamma, beta):
    """Pure-JAX reference of the same forward (for sanity check)."""
    w_sn = _spectral_normalize(weight)
    y = lax.conv_general_dilated(
        x, w_sn, window_strides=(2, 2), padding=((1, 1), (1, 1)),
        dimension_numbers=("NCHW", "OIHW", "NCHW"))
    mean = jnp.mean(y, axis=(0, 2, 3), keepdims=True)
    var = jnp.mean((y - mean) ** 2, axis=(0, 2, 3), keepdims=True)
    y = (y - mean) * lax.rsqrt(var + BN_EPS)
    y = y * gamma.reshape(1, -1, 1, 1) + beta.reshape(1, -1, 1, 1)
    return jnp.where(y >= 0, y, LEAKY_SLOPE * y)


if __name__ == "__main__":
    # Small shapes consistent with DownBlock(in_planes=4, out_planes=8)
    N, CIN, COUT, H, W = 2, 4, 8, 16, 16

    key = jax.random.PRNGKey(0)
    kx, kw = jax.random.split(key)
    x = jax.random.normal(kx, (N, CIN, H, W), dtype=jnp.float32)
    fan_in = CIN * 4 * 4
    weight = jax.random.normal(kw, (COUT, CIN, 4, 4), jnp.float32) * (1.0 / fan_in ** 0.5)
    gamma = jnp.ones((COUT,), jnp.float32)   # BatchNorm2d default init
    beta = jnp.zeros((COUT,), jnp.float32)

    out = downblock_forward(x, weight, gamma, beta)
    out = jax.block_until_ready(out)
    assert out.shape == (N, COUT, H // 2, W // 2), out.shape

    ref = jax.block_until_ready(_reference(x, weight, gamma, beta))
    assert jnp.allclose(out, ref, rtol=5e-2, atol=5e-2), float(
        jnp.max(jnp.abs(out - ref)))

    print("KERNEL_OK")
</pallas_src>

<mosaic_0001>
module attributes {stable_mosaic.version = 11 : i64} {
  func.func @_conv_stats_kernel(%arg0: i32, %arg1: i32, %arg2: memref<128x128xbf16, #tpu.memory_space<vmem>>, %arg3: memref<128x128xbf16, #tpu.memory_space<vmem>>, %arg4: memref<128x128xf32, #tpu.memory_space<vmem>>, %arg5: memref<1x2x128xf32, #tpu.memory_space<vmem>>) attributes {dimension_semantics = [#tpu.dimension_semantics<parallel>, #tpu.dimension_semantics<arbitrary>], iteration_bounds = array<i64: 1, 1>, scalar_prefetch = 0 : i64, scratch_operands = 0 : i64, tpu.core_type = #tpu.core_type<tc>, window_params = [{transform_indices = @transform_0, window_bounds = array<i64: 128, 128>}, {transform_indices = @transform_1, window_bounds = array<i64: 128, 128>}, {transform_indices = @transform_2, window_bounds = array<i64: 128, 128>}, {transform_indices = @transform_3, window_bounds = array<i64: 1, 2, 128>}]} {
    %c0 = arith.constant 0 : index
    %c0_0 = arith.constant 0 : index
    %0 = vector.load %arg2[%c0, %c0_0] : memref<128x128xbf16, #tpu.memory_space<vmem>>, vector<128x128xbf16>
    %c0_1 = arith.constant 0 : index
    %c0_2 = arith.constant 0 : index
    %1 = vector.load %arg3[%c0_1, %c0_2] : memref<128x128xbf16, #tpu.memory_space<vmem>>, vector<128x128xbf16>
    %cst = arith.constant dense<0.000000e+00> : vector<128x128xf32>
    %2 = tpu.matmul %0, %1, %cst {dimension_numbers = #tpu.dot_dimension_numbers<[1], [0], [0], [1], [0, 0, 1, 1], [], []>} : vector<128x128xbf16>, vector<128x128xbf16>, vector<128x128xf32> -> vector<128x128xf32>
    %c0_3 = arith.constant 0 : index
    %c0_4 = arith.constant 0 : index
    %3 = vector.load %arg4[%c0_3, %c0_4] : memref<128x128xf32, #tpu.memory_space<vmem>>, vector<128x128xf32>
    tpu.vector_store %arg4[%c0_3, %c0_4], %2 {strides = array<i32>} : memref<128x128xf32, #tpu.memory_space<vmem>>, vector<128x128xf32>,
    %cst_5 = arith.constant dense<0.000000e+00> : vector<128xf32>
    %4 = vector.multi_reduction <add>, %2, %cst_5 [0] : vector<128x128xf32> to vector<128xf32>
    %5 = vector.shape_cast %4 : vector<128xf32> to vector<1x128xf32>
    %6 = arith.mulf %2, %2 : vector<128x128xf32>
    %cst_6 = arith.constant dense<0.000000e+00> : vector<128xf32>
    %7 = vector.multi_reduction <add>, %6, %cst_6 [0] : vector<128x128xf32> to vector<128xf32>
    %8 = vector.shape_cast %7 : vector<128xf32> to vector<1x128xf32>
    %9 = tpu.concatenate %5, %8 in 0 : vector<1x128xf32>, vector<1x128xf32> -> vector<2x128xf32>
    %10 = vector.shape_cast %9 : vector<2x128xf32> to vector<1x2x128xf32>
    %c0_7 = arith.constant 0 : index
    %c0_8 = arith.constant 0 : index
    %c0_9 = arith.constant 0 : index
    %11 = vector.load %arg5[%c0_7, %c0_8, %c0_9] : memref<1x2x128xf32, #tpu.memory_space<vmem>>, vector<1x2x128xf32>
    tpu.vector_store %arg5[%c0_7, %c0_8, %c0_9], %10 {strides = array<i32>} : memref<1x2x128xf32, #tpu.memory_space<vmem>>, vector<1x2x128xf32>,
    return
  }
  func.func @transform_0(%arg0: i32, %arg1: i32) -> (i32, i32) {
    %c0_i32 = arith.constant 0 : i32
    return %arg0, %arg1 : i32, i32
  }
  func.func @transform_1(%arg0: i32, %arg1: i32) -> (i32, i32) {
    %c0_i32 = arith.constant 0 : i32
    %c0_i32_0 = arith.constant 0 : i32
    return %arg1, %c0_i32 : i32, i32
  }
  func.func @transform_2(%arg0: i32, %arg1: i32) -> (i32, i32) {
    %c0_i32 = arith.constant 0 : i32
    %c0_i32_0 = arith.constant 0 : i32
    return %arg0, %c0_i32 : i32, i32
  }
  func.func @transform_3(%arg0: i32, %arg1: i32) -> (i32, i32, i32) {
    %c0_i32 = arith.constant 0 : i32
    %c0_i32_0 = arith.constant 0 : i32
    %c0_i32_1 = arith.constant 0 : i32
    return %arg0, %c0_i32, %c0_i32_0 : i32, i32, i32
  }
}

module attributes {stable_mosaic.version = 11 : i64} {
  func.func @_bn_lrelu_kernel(%arg0: i32, %arg1: memref<128x128xf32, #tpu.memory_space<vmem>>, %arg2: memref<1x128xf32, #tpu.memory_space<vmem>>, %arg3: memref<1x128xf32, #tpu.memory_space<vmem>>, %arg4: memref<128x128xf32, #tpu.memory_space<vmem>>) attributes {dimension_semantics = [#tpu.dimension_semantics<parallel>], iteration_bounds = array<i64: 1>, scalar_prefetch = 0 : i64, scratch_operands = 0 : i64, tpu.core_type = #tpu.core_type<tc>, window_params = [{transform_indices = @transform_0, window_bounds = array<i64: 128, 128>}, {pipeline_mode = #tpu.pipeline_mode<synchronous>, transform_indices = @transform_1, window_bounds = array<i64: 1, 128>}, {pipeline_mode = #tpu.pipeline_mode<synchronous>, transform_indices = @transform_2, window_bounds = array<i64: 1, 128>}, {transform_indices = @transform_3, window_bounds = array<i64: 128, 128>}]} {
    %c0 = arith.constant 0 : index
    %c0_0 = arith.constant 0 : index
    %0 = vector.load %arg1[%c0, %c0_0] : memref<128x128xf32, #tpu.memory_space<vmem>>, vector<128x128xf32>
    %c0_1 = arith.constant 0 : index
    %c0_2 = arith.constant 0 : index
    %1 = vector.load %arg2[%c0_1, %c0_2] : memref<1x128xf32, #tpu.memory_space<vmem>>, vector<1x128xf32>
    %2 = vector.broadcast %1 : vector<1x128xf32> to vector<128x128xf32>
    %3 = arith.mulf %0, %2 : vector<128x128xf32>
    %c0_3 = arith.constant 0 : index
    %c0_4 = arith.constant 0 : index
    %4 = vector.load %arg3[%c0_3, %c0_4] : memref<1x128xf32, #tpu.memory_space<vmem>>, vector<1x128xf32>
    %5 = vector.broadcast %4 : vector<1x128xf32> to vector<128x128xf32>
    %6 = arith.addf %3, %5 : vector<128x128xf32>
    %cst = arith.constant 0.000000e+00 : f32
    %7 = vector.broadcast %cst : f32 to vector<128x128xf32>
    %8 = arith.cmpf oge, %6, %7 : vector<128x128xf32>
    %cst_5 = arith.constant 2.000000e-01 : f32
    %9 = vector.broadcast %cst_5 : f32 to vector<128x128xf32>
    %10 = arith.mulf %9, %6 : vector<128x128xf32>
    %11 = arith.select %8, %6, %10 : vector<128x128xi1>, vector<128x128xf32>
    %c0_6 = arith.constant 0 : index
    %c0_7 = arith.constant 0 : index
    %12 = vector.load %arg4[%c0_6, %c0_7] : memref<128x128xf32, #tpu.memory_space<vmem>>, vector<128x128xf32>
    tpu.vector_store %arg4[%c0_6, %c0_7], %11 {strides = array<i32>} : memref<128x128xf32, #tpu.memory_space<vmem>>, vector<128x128xf32>,
    return
  }
  func.func @transform_0(%arg0: i32) -> (i32, i32) {
    %c0_i32 = arith.constant 0 : i32
    %c0_i32_0 = arith.constant 0 : i32
    return %arg0, %c0_i32 : i32, i32
  }
  func.func @transform_1(%arg0: i32) -> (i32, i32) {
    %c0_i32 = arith.constant 0 : i32
    %c0_i32_0 = arith.constant 0 : i32
    %c0_i32_1 = arith.constant 0 : i32
    return %c0_i32, %c0_i32_0 : i32, i32
  }
  func.func @transform_2(%arg0: i32) -> (i32, i32) {
    %c0_i32 = arith.constant 0 : i32
    %c0_i32_0 = arith.constant 0 : i32
    %c0_i32_1 = arith.constant 0 : i32
    return %c0_i32, %c0_i32_0 : i32, i32
  }
  func.func @transform_3(%arg0: i32) -> (i32, i32) {
    %c0_i32 = arith.constant 0 : i32
    %c0_i32_0 = arith.constant 0 : i32
    return %arg0, %c0_i32 : i32, i32
  }
}

</mosaic_0001>

<bundles_post_ra>
// kernel: custom-call
= control target key start
LH: loop header
LB: loop body
LE: loop exit
PB: predicated region body
PF: predicated region fallthrough
CT: control target
= control target key end

     0   :  { %s6_s0 = inlined_call_operand.vmem [shape: f32[8], index: 0, kind: output, shape index: {}]  }

// kernel: downblock_forward.2
= control target key start
LH: loop header
LB: loop body
LE: loop exit
PB: predicated region body
PF: predicated region fallthrough
CT: control target
= control target key end

     0   :  { %vm264_vm0 = vcmask 1040384   ;;  %s498_s1 = inlined_call_operand.vmem [shape: bf16[128,128], index: 1, kind: input, shape index: {}]   ;;  %s499_s0 = inlined_call_operand.vmem [shape: bf16[128,128], index: 0, kind: input, shape index: {}]   ;;  %s500_s2 = inlined_call_operand.vmem [shape: f32[128,128], index: 2, kind: output, shape index: {0}]   ;;  %s501_s3 = inlined_call_operand.vmem [shape: f32[1,2,128], index: 3, kind: output, shape index: {1}]  }
   0x1   :  { %v354_v0 = vld [vmem:[%s498_s1 + $0x38] sm:$0xff]  ;;  %v353_v1 = vld [vmem:[%s498_s1 + $0x30] sm:$0xff]  ;;  %v352_v2 = vld [vmem:[%s498_s1 + $0x28] sm:$0xff] }
   0x2   :  { %141 = vmatpush.bf16.msra.mxu0 %v354_v0  ;;  %355 = vmatpush.bf16.msra.mxu1 %v354_v0  ;;  %v351_v3 = vld [vmem:[%s498_s1 + $0x20] sm:$0xff]  ;;  %v350_v4 = vld [vmem:[%s498_s1 + $0x18] sm:$0xff]  ;;  %v349_v5 = vld [vmem:[%s498_s1 + $0x10] sm:$0xff] }
   0x3   :  { %356 = vmatpush.bf16.msra.mxu2 %v354_v0  ;;  %357 = vmatpush.bf16.msra.mxu3 %v354_v0  ;;  %v348_v6 = vld [vmem:[%s498_s1 + $0x8] sm:$0xff]  ;;  %v347_v7 = vld [vmem:[%s498_s1] sm:$0xff]  ;;  %v341_v9 = vld [vmem:[%s499_s0 + $0x10] sm:$0xff] }
   0x4   :  { %v339_v8 = vld [vmem:[%s499_s0] sm:$0xff]  ;;  %v345_v11 = vld [vmem:[%s499_s0 + $0x30] sm:$0xff]  ;;  %v340_v12 = vld [vmem:[%s499_s0 + $0x8] sm:$0xff] }
   0x5   :  { %v343_v10 = vld [vmem:[%s499_s0 + $0x20] sm:$0xff]  ;;  %v342_v13 = vld [vmem:[%s499_s0 + $0x18] sm:$0xff]  ;;  %v344_v14 = vld [vmem:[%s499_s0 + $0x28] sm:$0xff] }
   0x6   :  { %142 = vmatpush.bf16.msra.mxu0 %v353_v1  ;;  %358 = vmatpush.bf16.msra.mxu1 %v353_v1  ;;  %v346_v15 = vld [vmem:[%s499_s0 + $0x38] sm:$0xff] }
   0x7   :  { %359 = vmatpush.bf16.msra.mxu2 %v353_v1  ;;  %360 = vmatpush.bf16.msra.mxu3 %v353_v1 }
   0xa   :  { %143 = vmatpush.bf16.msra.mxu0 %v352_v2  ;;  %361 = vmatpush.bf16.msra.mxu1 %v352_v2 }
   0xb   :  { %362 = vmatpush.bf16.msra.mxu2 %v352_v2  ;;  %363 = vmatpush.bf16.msra.mxu3 %v352_v2 }
   0xe   :  { %144 = vmatpush.bf16.msra.mxu0 %v351_v3  ;;  %364 = vmatpush.bf16.msra.mxu1 %v351_v3 }
   0xf   :  { %365 = vmatpush.bf16.msra.mxu2 %v351_v3  ;;  %366 = vmatpush.bf16.msra.mxu3 %v351_v3 }
  0x12   :  { %145 = vmatpush.bf16.msra.mxu0 %v350_v4  ;;  %367 = vmatpush.bf16.msra.mxu1 %v350_v4 }
  0x13   :  { %368 = vmatpush.bf16.msra.mxu2 %v350_v4  ;;  %369 = vmatpush.bf16.msra.mxu3 %v350_v4 }
  0x16   :  { %146 = vmatpush.bf16.msra.mxu0 %v349_v5  ;;  %370 = vmatpush.bf16.msra.mxu1 %v349_v5 }
  0x17   :  { %371 = vmatpush.bf16.msra.mxu2 %v349_v5  ;;  %372 = vmatpush.bf16.msra.mxu3 %v349_v5 }
  0x1a   :  { %147 = vmatpush.bf16.msra.mxu0 %v348_v6  ;;  %373 = vmatpush.bf16.msra.mxu1 %v348_v6 }
  0x1b   :  { %374 = vmatpush.bf16.msra.mxu2 %v348_v6  ;;  %375 = vmatpush.bf16.msra.mxu3 %v348_v6 }
  0x1e   :  { %148 = vmatpush.bf16.msra.mxu0 %v347_v7  ;;  %376 = vmatpush.bf16.msra.mxu1 %v347_v7 }
  0x1f   :  { %377 = vmatpush.bf16.msra.mxu2 %v347_v7  ;;  %378 = vmatpush.bf16.msra.mxu3 %v347_v7 }
  0x21   :  { %149 = vmatmul.bf16.vlgmr.msra.gmra.mxu0 %v339_v8  ;;  %159 = vmatmul.bf16.vlgmr.msra.gmra.mxu1 %v341_v9 }
  0x22   :  { %169 = vmatmul.bf16.vlgmr.msra.gmra.mxu2 %v343_v10  ;;  %179 = vmatmul.bf16.vlgmr.msra.gmra.mxu3 %v345_v11 }
  0x31   :  { %154 = vmatmul.bf16.gmra.mxu0 %v340_v12  ;;  %164 = vmatmul.bf16.gmra.mxu1 %v342_v13 }
  0x32   :  { %174 = vmatmul.bf16.gmra.mxu2 %v344_v14  ;;  %184 = vmatmul.bf16.gmra.mxu3 %v346_v15 }
  0x9e   :  { %v150_v16 = vpop.f32.mrf.mxu0  ;;  %v160_v17 = vpop.f32.mrf.mxu1 }
  0x9f   :  { %190 = vst [vmem:[%s500_s2] sm:$0xff] %v150_v16  ;;  %v227_v27 = vmul.f32 %v150_v16, %v150_v16  ;;  %v231_v39 = vmul.f32 %v160_v17, %v160_v17 }
  0xa0   :  { %194 = vst [vmem:[%s500_s2 + $0x20] sm:$0xff] %v160_v17 }
  0xa5   :  { %v170_v18 = vpop.f32.mrf.mxu2  ;;  %v180_v19 = vpop.f32.mrf.mxu3 }
  0xa6   :  { %v152_v20 = vpop.f32.mrf.mxu0  ;;  %v162_v21 = vpop.f32.mrf.mxu1  ;;  %198 = vst [vmem:[%s500_s2 + $0x40] sm:$0xff] %v170_v18  ;;  %v235_v53 = vmul.f32 %v170_v18, %v170_v18  ;;  %v239_v1 = vmul.f32 %v180_v19, %v180_v19 }
  0xa7   :  { %191 = vst [vmem:[%s500_s2 + $0x8] sm:$0xff] %v152_v20  ;;  %v228_v26 = vmul.f32 %v152_v20, %v152_v20  ;;  %v206_v28 = vadd.f32 %v152_v20, %v150_v16  ;;  %v232_v42 = vmul.f32 %v162_v21, %v162_v21 }
  0xa8   :  { %195 = vst [vmem:[%s500_s2 + $0x28] sm:$0xff] %v162_v21 }
  0xa9   :  { %202 = vst [vmem:[%s500_s2 + $0x60] sm:$0xff] %v180_v19  ;;  %v243_v30 = vadd.f32 %v228_v26, %v227_v27 }
  0xad   :  { %v172_v22 = vpop.f32.mrf.mxu2  ;;  %v182_v23 = vpop.f32.mrf.mxu3 }
  0xae   :  { %v155_v24 = vpop.f32.mrf.mxu0  ;;  %v165_v25 = vpop.f32.mrf.mxu1  ;;  %199 = vst [vmem:[%s500_s2 + $0x48] sm:$0xff] %v172_v22  ;;  %v236_v56 = vmul.f32 %v172_v22, %v172_v22  ;;  %v240_v4 = vmul.f32 %v182_v23, %v182_v23 }
  0xaf   :  { %192 = vst [vmem:[%s500_s2 + $0x10] sm:$0xff] %v155_v24  ;;  %v229_v29 = vmul.f32 %v155_v24, %v155_v24  ;;  %v207_v31 = vadd.f32 %v206_v28, %v155_v24  ;;  %v233_v45 = vmul.f32 %v165_v25, %v165_v25 }
  0xb0   :  { %196 = vst [vmem:[%s500_s2 + $0x30] sm:$0xff] %v165_v25 }
  0xb1   :  { %203 = vst [vmem:[%s500_s2 + $0x68] sm:$0xff] %v182_v23  ;;  %v244_v36 = vadd.f32 %v243_v30, %v229_v29 }
  0xb5   :  { %v175_v32 = vpop.f32.mrf.mxu2  ;;  %v185_v33 = vpop.f32.mrf.mxu3 }
  0xb6   :  { %v157_v34 = vpop.f32.mrf.mxu0  ;;  %v167_v35 = vpop.f32.mrf.mxu1  ;;  %200 = vst [vmem:[%s500_s2 + $0x50] sm:$0xff] %v175_v32  ;;  %v237_v60 = vmul.f32 %v175_v32, %v175_v32  ;;  %v241_v8 = vmul.f32 %v185_v33, %v185_v33 }
  0xb7   :  { %193 = vst [vmem:[%s500_s2 + $0x18] sm:$0xff] %v157_v34  ;;  %v208_v37 = vadd.f32 %v207_v31, %v157_v34  ;;  %v230_v38 = vmul.f32 %v157_v34, %v157_v34  ;;  %v234_v51 = vmul.f32 %v167_v35, %v167_v35 }
  0xb8   :  { %197 = vst [vmem:[%s500_s2 + $0x38] sm:$0xff] %v167_v35 }
  0xb9   :  { %v209_v40 = vadd.f32 %v208_v37, %v160_v17  ;;  %v245_v41 = vadd.f32 %v244_v36, %v230_v38  ;;  %204 = vst [vmem:[%s500_s2 + $0x70] sm:$0xff] %v185_v33 }
  0xbb   :  { %v246_v43 = vadd.f32 %v245_v41, %v231_v39  ;;  %v210_v44 = vadd.f32 %v209_v40, %v162_v21 }
  0xbd   :  { %v211_v46 = vadd.f32 %v210_v44, %v165_v25  ;;  %v247_v47 = vadd.f32 %v246_v43, %v232_v42  ;;  %v177_v48 = vpop.f32.mrf.mxu2  ;;  %v187_v49 = vpop.f32.mrf.mxu3 }
  0xbe   :  { %201 = vst [vmem:[%s500_s2 + $0x58] sm:$0xff] %v177_v48  ;;  %v238_v0 = vmul.f32 %v177_v48, %v177_v48  ;;  %v242_v12 = vmul.f32 %v187_v49, %v187_v49 }
  0xbf   :  { %v212_v50 = vadd.f32 %v211_v46, %v167_v35  ;;  %v248_v52 = vadd.f32 %v247_v47, %v233_v45  ;;  %205 = vst [vmem:[%s500_s2 + $0x78] sm:$0xff] %v187_v49 }
  0xc1   :  { %v213_v54 = vadd.f32 %v212_v50, %v170_v18  ;;  %v249_v55 = vadd.f32 %v248_v52, %v234_v51 }
  0xc3   :  { %v250_v57 = vadd.f32 %v249_v55, %v235_v53  ;;  %v214_v58 = vadd.f32 %v213_v54, %v172_v22 }
  0xc5   :  { %v215_v59 = vadd.f32 %v214_v58, %v175_v32  ;;  %v251_v61 = vadd.f32 %v250_v57, %v236_v56 }
  0xc7   :  { %v252_v62 = vadd.f32 %v251_v61, %v237_v60  ;;  %v216_v63 = vadd.f32 %v215_v59, %v177_v48 }
  0xc9   :  { %v217_v2 = vadd.f32 %v216_v63, %v180_v19  ;;  %v253_v3 = vadd.f32 %v252_v62, %v238_v0 }
  0xcb   :  { %v254_v5 = vadd.f32 %v253_v3, %v239_v1  ;;  %v218_v6 = vadd.f32 %v217_v2, %v182_v23 }
  0xcd   :  { %v219_v7 = vadd.f32 %v218_v6, %v185_v33  ;;  %v255_v9 = vadd.f32 %v254_v5, %v240_v4 }
  0xcf   :  { %v256_v10 = vadd.f32 %v255_v9, %v241_v8  ;;  %v220_v11 = vadd.f32 %v219_v7, %v187_v49 }
  0xd1   :  { %v221_v13 = vrot.slane %v220_v11, 4  ;;  %v257_v14 = vadd.f32 %v256_v10, %v242_v12 }
  0xd3   :  { %v222_v15 = vadd.f32 %v221_v13, %v220_v11  ;;  %v258_v16 = vrot.slane %v257_v14, 4 }
  0xd5   :  { %v223_v17 = vrot.slane %v222_v15, 2  ;;  %v259_v18 = vadd.f32 %v258_v16, %v257_v14 }
  0xd7   :  { %v224_v20 = vadd.f32 %v223_v17, %v222_v15  ;;  %v260_v21 = vrot.slane %v259_v18, 2 }
  0xd9   :  { %v225_v22 = vrot.slane %v224_v20, 1  ;;  %v261_v19 = vadd.f32 %v260_v21, %v259_v18 }
  0xdb   :  { %v262_v24 = vrot.slane %v261_v19, 1  ;;  %v226_v25 = vadd.f32 %v225_v22, %v224_v20 }
  0xdd   :  { %v263_v23 = vadd.f32 %v262_v24, %v261_v19 }
  0xdf   :  { %v265_v26 = vsel %vm264_vm0, %v226_v25, %v263_v23 }
  0xe0   :  { %266 = vst [vmem:[%s501_s3] sm:$0x3] %v265_v26 }

// kernel: downblock_forward.3
= control target key start
LH: loop header
LB: loop body
LE: loop exit
PB: predicated region body
PF: predicated region fallthrough
CT: control target
= control target key end

     0   :  { %s298_s0 = inlined_call_operand.vmem [shape: f32[128,128], index: 0, kind: input, shape index: {}]   ;;  %s299_s1 = inlined_call_operand.vmem [shape: f32[1,128], index: 1, kind: input, shape index: {}]   ;;  %s300_s2 = inlined_call_operand.vmem [shape: f32[1,128], index: 2, kind: input, shape index: {}]   ;;  %s301_s3 = inlined_call_operand.vmem [shape: f32[128,128], index: 3, kind: output, shape index: {}]  }
   0x1   :  { %v14_v0 = vld [vmem:[%s298_s0] sm:$0xff]  ;;  %v15_v3 = vld [vmem:[%s298_s0 + $0x8] sm:$0xff]  ;;  %v16_v6 = vld [vmem:[%s298_s0 + $0x10] sm:$0xff] }
   0x2   :  { %v166_v1 = vld [vmem:[%s299_s1] ss:$0 sm:$0xff]  ;;  %v17_v7 = vld [vmem:[%s298_s0 + $0x18] sm:$0xff]  ;;  %v19_v12 = vld [vmem:[%s298_s0 + $0x28] sm:$0xff] }
   0x3   :  { %v171_v2 = vld [vmem:[%s300_s2] ss:$0 sm:$0xff]  ;;  %v34_v4 = vmul.f32 %v166_v1, %v14_v0  ;;  %v35_v5 = vmul.f32 %v166_v1, %v15_v3  ;;  %v36_v9 = vmul.f32 %v166_v1, %v16_v6  ;;  %v37_v10 = vmul.f32 %v166_v1, %v17_v7  ;;  %v20_v13 = vld [vmem:[%s298_s0 + $0x30] sm:$0xff]  ;;  %v21_v14 = vld [vmem:[%s298_s0 + $0x38] sm:$0xff] }
   0x4   :  { %v18_v8 = vld [vmem:[%s298_s0 + $0x20] sm:$0xff]  ;;  %v39_v17 = vmul.f32 %v166_v1, %v19_v12  ;;  %v40_v18 = vmul.f32 %v166_v1, %v20_v13  ;;  %v41_v22 = vmul.f32 %v166_v1, %v21_v14  ;;  %v23_v24 = vld [vmem:[%s298_s0 + $0x48] sm:$0xff]  ;;  %v24_v32 = vld [vmem:[%s298_s0 + $0x50] sm:$0xff] }
   0x5   :  { %v38_v11 = vmul.f32 %v166_v1, %v18_v8  ;;  %v54_v15 = vadd.f32 %v171_v2, %v34_v4  ;;  %v55_v16 = vadd.f32 %v171_v2, %v35_v5  ;;  %v56_v19 = vadd.f32 %v171_v2, %v36_v9  ;;  %v22_v23 = vld [vmem:[%s298_s0 + $0x40] sm:$0xff]  ;;  %v25_v41 = vld [vmem:[%s298_s0 + $0x58] sm:$0xff]  ;;  %v27_v52 = vld [vmem:[%s298_s0 + $0x68] sm:$0xff] }
   0x6   :  { %v57_v20 = vadd.f32 %v171_v2, %v37_v10  ;;  %v59_v35 = vadd.f32 %v171_v2, %v39_v17  ;;  %v60_v36 = vadd.f32 %v171_v2, %v40_v18  ;;  %v61_v38 = vadd.f32 %v171_v2, %v41_v22  ;;  %v26_v51 = vld [vmem:[%s298_s0 + $0x60] sm:$0xff]  ;;  %v28_v56 = vld [vmem:[%s298_s0 + $0x70] sm:$0xff]  ;;  %v29_v59 = vld [vmem:[%s298_s0 + $0x78] sm:$0xff] }
   0x7   :  { %v58_v21 = vadd.f32 %v171_v2, %v38_v11  ;;  %vm70_vm0 = vcmp.ge.f32.partialorder %v54_v15, 0.0  ;;  %v86_v25 = vmul.f32 0.2, %v54_v15  ;;  %vm71_vm1 = vcmp.ge.f32.partialorder %v55_v16, 0.0 }
   0x8   :  { %v87_v26 = vmul.f32 0.2, %v55_v16  ;;  %vm72_vm2 = vcmp.ge.f32.partialorder %v56_v19, 0.0  ;;  %v88_v27 = vmul.f32 0.2, %v56_v19  ;;  %vm73_vm3 = vcmp.ge.f32.partialorder %v57_v20, 0.0 }
   0x9   :  { %v89_v28 = vmul.f32 0.2, %v57_v20  ;;  %v102_v29 = vsel %vm70_vm0, %v54_v15, %v86_v25  ;;  %vm74_vm4 = vcmp.ge.f32.partialorder %v58_v21, 0.0  ;;  %v90_v31 = vmul.f32 0.2, %v58_v21 }
   0xa   :  { %v103_v30 = vsel %vm71_vm1, %v55_v16, %v87_v26  ;;  %118 = vst [vmem:[%s301_s3] sm:$0xff] %v102_v29  ;;  %v104_v33 = vsel %vm72_vm2, %v56_v19, %v88_v27  ;;  %v42_v39 = vmul.f32 %v166_v1, %v22_v23  ;;  %v43_v40 = vmul.f32 %v166_v1, %v23_v24 }
   0xb   :  { %v105_v34 = vsel %vm73_vm3, %v57_v20, %v89_v28  ;;  %119 = vst [vmem:[%s301_s3 + $0x8] sm:$0xff] %v103_v30  ;;  %v106_v37 = vsel %vm74_vm4, %v58_v21, %v90_v31  ;;  %vm75_vm5 = vcmp.ge.f32.partialorder %v59_v35, 0.0  ;;  %v91_v42 = vmul.f32 0.2, %v59_v35 }
   0xc   :  { %120 = vst [vmem:[%s301_s3 + $0x10] sm:$0xff] %v104_v33  ;;  %vm76_vm6 = vcmp.ge.f32.partialorder %v60_v36, 0.0  ;;  %v44_v43 = vmul.f32 %v166_v1, %v24_v32  ;;  %v92_v44 = vmul.f32 0.2, %v60_v36  ;;  %vm77_vm7 = vcmp.ge.f32.partialorder %v61_v38, 0.0 }
   0xd   :  { %121 = vst [vmem:[%s301_s3 + $0x18] sm:$0xff] %v105_v34  ;;  %v93_v45 = vmul.f32 0.2, %v61_v38  ;;  %v62_v46 = vadd.f32 %v171_v2, %v42_v39  ;;  %v107_v47 = vsel %vm75_vm5, %v59_v35, %v91_v42  ;;  %v63_v48 = vadd.f32 %v171_v2, %v43_v40 }
   0xe   :  { %122 = vst [vmem:[%s301_s3 + $0x20] sm:$0xff] %v106_v37  ;;  %v64_v49 = vadd.f32 %v171_v2, %v44_v43  ;;  %v45_v50 = vmul.f32 %v166_v1, %v25_v41  ;;  %v108_v53 = vsel %vm76_vm6, %v60_v36, %v92_v44  ;;  %v46_v62 = vmul.f32 %v166_v1, %v26_v51 }
   0xf   :  { %123 = vst [vmem:[%s301_s3 + $0x28] sm:$0xff] %v107_v47  ;;  %v109_v54 = vsel %vm77_vm7, %v61_v38, %v93_v45  ;;  %vm78_vm8 = vcmp.ge.f32.partialorder %v62_v46, 0.0  ;;  %v94_v55 = vmul.f32 0.2, %v62_v46  ;;  %vm79_vm9 = vcmp.ge.f32.partialorder %v63_v48, 0.0 }
  0x10   :  { %124 = vst [vmem:[%s301_s3 + $0x30] sm:$0xff] %v108_v53  ;;  %v95_v57 = vmul.f32 0.2, %v63_v48  ;;  %vm80_vm10 = vcmp.ge.f32.partialorder %v64_v49, 0.0  ;;  %v65_v58 = vadd.f32 %v171_v2, %v45_v50  ;;  %v96_v61 = vmul.f32 0.2, %v64_v49 }
  0x11   :  { %125 = vst [vmem:[%s301_s3 + $0x38] sm:$0xff] %v109_v54  ;;  %v110_v60 = vsel %vm78_vm8, %v62_v46, %v94_v55  ;;  %v47_v63 = vmul.f32 %v166_v1, %v27_v52  ;;  %v48_v4 = vmul.f32 %v166_v1, %v28_v56  ;;  %v66_v6 = vadd.f32 %v171_v2, %v46_v62 }
  0x12   :  { %126 = vst [vmem:[%s301_s3 + $0x40] sm:$0xff] %v110_v60  ;;  %v111_v0 = vsel %vm79_vm9, %v63_v48, %v95_v57  ;;  %vm81_vm11 = vcmp.ge.f32.partialorder %v65_v58, 0.0  ;;  %v97_v3 = vmul.f32 0.2, %v65_v58  ;;  %v112_v5 = vsel %vm80_vm10, %v64_v49, %v96_v61 }
  0x13   :  { %127 = vst [vmem:[%s301_s3 + $0x48] sm:$0xff] %v111_v0  ;;  %v67_v7 = vadd.f32 %v171_v2, %v47_v63  ;;  %v49_v8 = vmul.f32 %v166_v1, %v29_v59  ;;  %v68_v10 = vadd.f32 %v171_v2, %v48_v4  ;;  %vm82_vm12 = vcmp.ge.f32.partialorder %v66_v6, 0.0 }
  0x14   :  { %128 = vst [vmem:[%s301_s3 + $0x50] sm:$0xff] %v112_v5  ;;  %v113_v9 = vsel %vm81_vm11, %v65_v58, %v97_v3  ;;  %v98_v11 = vmul.f32 0.2, %v66_v6 }
  0x15   :  { %129 = vst [vmem:[%s301_s3 + $0x58] sm:$0xff] %v113_v9  ;;  %vm83_vm13 = vcmp.ge.f32.partialorder %v67_v7, 0.0  ;;  %v69_v12 = vadd.f32 %v171_v2, %v49_v8  ;;  %v99_v13 = vmul.f32 0.2, %v67_v7  ;;  %vm84_vm14 = vcmp.ge.f32.partialorder %v68_v10, 0.0 }
  0x16   :  { %v100_v14 = vmul.f32 0.2, %v68_v10  ;;  %v114_v1 = vsel %vm82_vm12, %v66_v6, %v98_v11 }
  0x17   :  { %vm85_vm15 = vcmp.ge.f32.partialorder %v69_v12, 0.0  ;;  %v101_v15 = vmul.f32 0.2, %v69_v12  ;;  %130 = vst [vmem:[%s301_s3 + $0x60] sm:$0xff] %v114_v1  ;;  %v115_v16 = vsel %vm83_vm13, %v67_v7, %v99_v13 }
  0x18   :  { %v116_v17 = vsel %vm84_vm14, %v68_v10, %v100_v14  ;;  %131 = vst [vmem:[%s301_s3 + $0x68] sm:$0xff] %v115_v16 }
  0x19   :  { %v117_v18 = vsel %vm85_vm15, %v69_v12, %v101_v15  ;;  %132 = vst [vmem:[%s301_s3 + $0x70] sm:$0xff] %v116_v17 }
  0x1a   :  { %133 = vst [vmem:[%s301_s3 + $0x78] sm:$0xff] %v117_v18 }

</bundles_post_ra>
